<compile_context>
chip_gen: v6e
topology: v6e:2x2x1
jax: 0.10.0
libtpu: 0.0.40
codegen_flags: <defaults>
</compile_context>

<pallas_src>
import functools

import jax
import jax.numpy as jnp
import numpy as np
from jax.experimental import pallas as pl
from jax.experimental.pallas import tpu as pltpu


def _round_up(x, m):
    return ((x + m - 1) // m) * m


# ----------------------------- fused Pallas kernel ---------------------------

def fused_fc_kernel(x_ref, *args, eps, n_layers):
    """LayerNorm (affine folded into layer 0) -> [Linear -> Tanh] * n_layers.

    args = (w0, b0, w1, b1, ..., w_{L-1}, b_{L-1}, o_ref)
    Weights are pre-transposed to [in, out]; gamma/beta are folded into w0/b0.
    """
    o_ref = args[-1]
    wb = args[:-1]

    # LayerNorm statistics over the feature (lane) axis, in f32.
    x = x_ref[...].astype(jnp.float32)
    mean = jnp.mean(x, axis=-1, keepdims=True)
    var = jnp.mean((x - mean) ** 2, axis=-1, keepdims=True)
    h = (x - mean) * jax.lax.rsqrt(var + eps)

    # Hidden layers: h @ W + b, tanh epilogue. All intermediates stay in vregs.
    for l in range(n_layers):
        w = wb[2 * l][...]
        b = wb[2 * l + 1][...].astype(jnp.float32)
        h = jnp.tanh(jnp.dot(h, w, preferred_element_type=jnp.float32) + b)

    o_ref[...] = h.astype(o_ref.dtype)


# ------------------------------ JAX wrapper ----------------------------------

def fc_model_forward(x, params, *, eps=1e-5, tm_cap=2048):
    """x: [B, S, F] -> [B, S, output_size], single fused pallas_call."""
    B, S, F = x.shape
    M = B * S

    # Pad rows only to the f32 sublane multiple (8); <=7 extra rows, negligible.
    M_pad = _round_up(M, 8)
    x2d = x.reshape(M, F)
    if M_pad != M:
        x2d = jnp.pad(x2d, ((0, M_pad - M), (0, 0)))

    layers = params["layers"]
    n_layers = len(layers)
    n_out = layers[-1][0].shape[1]

    # Fold LayerNorm affine into the first Linear (exact algebra):
    #   (x_norm * gamma + beta) @ W0 + b0 = x_norm @ (gamma[:,None]*W0) + (beta@W0 + b0)
    gamma = params["ln_gamma"].astype(jnp.float32)
    beta = params["ln_beta"].astype(jnp.float32)

    flat_args = []
    for li, (w, b) in enumerate(layers):
        w = w.astype(jnp.float32)
        b = b.astype(jnp.float32)
        if li == 0:
            b = beta @ w + b
            w = gamma[:, None] * w
        flat_args.append(w)
        flat_args.append(b.reshape(1, -1))

    # Row tile: big to amortize the ~0.35us per-grid-step overhead, but keep
    # >=2 grid steps when there is enough work so v7x's two TCs both run.
    if M_pad <= 1024:
        tm = M_pad
    else:
        n_steps = max(2, pl.cdiv(M_pad, tm_cap))
        tm = _round_up(pl.cdiv(M_pad, n_steps), 8)
    grid = pl.cdiv(M_pad, tm)

    in_specs = [
        pl.BlockSpec((tm, F), lambda i: (i, 0)),   # activations: streamed rows
    ]
    for a in flat_args:
        # full-array blocks, constant index_map -> DMA'd once, VMEM resident
        in_specs.append(pl.BlockSpec(a.shape, lambda i: (0, 0)))

    out = pl.pallas_call(
        functools.partial(fused_fc_kernel, eps=eps, n_layers=n_layers),
        out_shape=jax.ShapeDtypeStruct((M_pad, n_out), x.dtype),
        grid=(grid,),
        in_specs=in_specs,
        # Narrow, lane-real output: last block dim == full array dim (allowed),
        # single contiguous DMA per tile, no padded writeback or wrapper slice pass.
        out_specs=pl.BlockSpec((tm, n_out), lambda i: (i, 0)),
        compiler_params=pltpu.CompilerParams(
            dimension_semantics=("parallel",)),
    )(x2d, *flat_args)

    return out[:M, :].reshape(B, S, n_out)


# --------------------------- parameter construction --------------------------

def init_params(key, n_features, sizes):
    """Deterministic init mirroring nn.LayerNorm / nn.Linear shapes.

    sizes: layer sizes excluding input size (the module inserts n_features).
    Weights are stored transposed as [in, out] for the kernel.
    """
    full_sizes = [n_features] + list(sizes)
    k_ln, key = jax.random.split(key)
    params = {
        # nn.LayerNorm default init is ones/zeros; perturb slightly so the
        # affine path is exercised, still deterministic.
        "ln_gamma": 1.0 + 0.01 * jax.random.normal(k_ln, (n_features,), jnp.float32),
        "ln_beta": 0.01 * jax.random.normal(jax.random.fold_in(k_ln, 1),
                                            (n_features,), jnp.float32),
        "layers": [],
    }
    for size_in, size_out in zip(full_sizes[:-1], full_sizes[1:]):
        kw, kb, key = jax.random.split(key, 3)
        bound = 1.0 / np.sqrt(size_in)  # nn.Linear default uniform bound
        w = jax.random.uniform(kw, (size_in, size_out), jnp.float32, -bound, bound)
        b = jax.random.uniform(kb, (size_out,), jnp.float32, -bound, bound)
        params["layers"].append((w, b))
    return params


# ------------------------------ reference (JAX) -------------------------------

def fc_model_reference(x, params, eps=1e-5):
    mean = jnp.mean(x, axis=-1, keepdims=True)
    var = jnp.mean((x - mean) ** 2, axis=-1, keepdims=True)
    h = (x - mean) * jax.lax.rsqrt(var + eps) * params["ln_gamma"] + params["ln_beta"]
    for (w_kn, b_n) in params["layers"]:
        h = jnp.tanh(h @ w_kn + b_n)
    return h


# ----------------------------------- main -------------------------------------

if __name__ == "__main__":
    key = jax.random.PRNGKey(0)
    kx, kp = jax.random.split(key)

    batch, slate_len, n_features = 2, 8, 32
    sizes = [64, 32, 8]          # hidden sizes + output_size=8

    x = jax.random.normal(kx, (batch, slate_len, n_features), jnp.float32)
    params = init_params(kp, n_features, sizes)

    out = fc_model_forward(x, params)
    out = jax.block_until_ready(out)

    ref = fc_model_reference(x, params)
    assert out.shape == (batch, slate_len, sizes[-1])
    np.testing.assert_allclose(np.asarray(out), np.asarray(ref), rtol=1e-4, atol=1e-4)

    # Shape where batch*slate_len is not a multiple of 8 (row pad path).
    x2 = jax.random.normal(jax.random.fold_in(kx, 7), (3, 5, n_features), jnp.float32)
    out2 = jax.block_until_ready(fc_model_forward(x2, params))
    np.testing.assert_allclose(np.asarray(out2), np.asarray(fc_model_reference(x2, params)),
                               rtol=1e-4, atol=1e-4)

    # Larger shape exercising >=2 grid steps and a ragged last tile.
    x3 = jax.random.normal(jax.random.fold_in(kx, 11), (3, 700, n_features), jnp.float32)
    out3 = jax.block_until_ready(fc_model_forward(x3, params))
    np.testing.assert_allclose(np.asarray(out3), np.asarray(fc_model_reference(x3, params)),
                               rtol=1e-4, atol=1e-4)

    print("KERNEL_OK")
</pallas_src>

<mosaic_0001>
module attributes {stable_mosaic.version = 11 : i64} {
  func.func @fused_fc_kernel(%arg0: i32, %arg1: memref<16x32xf32, #tpu.memory_space<vmem>>, %arg2: memref<32x64xf32, #tpu.memory_space<vmem>>, %arg3: memref<1x64xf32, #tpu.memory_space<vmem>>, %arg4: memref<64x32xf32, #tpu.memory_space<vmem>>, %arg5: memref<1x32xf32, #tpu.memory_space<vmem>>, %arg6: memref<32x8xf32, #tpu.memory_space<vmem>>, %arg7: memref<1x8xf32, #tpu.memory_space<vmem>>, %arg8: memref<16x8xf32, #tpu.memory_space<vmem>>) attributes {dimension_semantics = [#tpu.dimension_semantics<parallel>], iteration_bounds = array<i64: 1>, scalar_prefetch = 0 : i64, scratch_operands = 0 : i64, tpu.core_type = #tpu.core_type<tc>, window_params = [{transform_indices = @transform_0, window_bounds = array<i64: 16, 32>}, {pipeline_mode = #tpu.pipeline_mode<synchronous>, transform_indices = @transform_1, window_bounds = array<i64: 32, 64>}, {pipeline_mode = #tpu.pipeline_mode<synchronous>, transform_indices = @transform_2, window_bounds = array<i64: 1, 64>}, {pipeline_mode = #tpu.pipeline_mode<synchronous>, transform_indices = @transform_3, window_bounds = array<i64: 64, 32>}, {pipeline_mode = #tpu.pipeline_mode<synchronous>, transform_indices = @transform_4, window_bounds = array<i64: 1, 32>}, {pipeline_mode = #tpu.pipeline_mode<synchronous>, transform_indices = @transform_5, window_bounds = array<i64: 32, 8>}, {pipeline_mode = #tpu.pipeline_mode<synchronous>, transform_indices = @transform_6, window_bounds = array<i64: 1, 8>}, {transform_indices = @transform_7, window_bounds = array<i64: 16, 8>}]} {
    %c0 = arith.constant 0 : index
    %c0_0 = arith.constant 0 : index
    %0 = vector.load %arg1[%c0, %c0_0] : memref<16x32xf32, #tpu.memory_space<vmem>>, vector<16x32xf32>
    %cst = arith.constant dense<0.000000e+00> : vector<16xf32>
    %1 = vector.multi_reduction <add>, %0, %cst [1] : vector<16x32xf32> to vector<16xf32>
    %2 = vector.shape_cast %1 : vector<16xf32> to vector<16x1xf32>
    %cst_1 = arith.constant 3.200000e+01 : f32
    %3 = vector.broadcast %cst_1 : f32 to vector<16x1xf32>
    %4 = arith.divf %2, %3 : vector<16x1xf32>
    %5 = vector.broadcast %4 : vector<16x1xf32> to vector<16x32xf32>
    %6 = arith.subf %0, %5 : vector<16x32xf32>
    %7 = arith.mulf %6, %6 : vector<16x32xf32>
    %cst_2 = arith.constant dense<0.000000e+00> : vector<16xf32>
    %8 = vector.multi_reduction <add>, %7, %cst_2 [1] : vector<16x32xf32> to vector<16xf32>
    %9 = vector.shape_cast %8 : vector<16xf32> to vector<16x1xf32>
    %cst_3 = arith.constant 3.200000e+01 : f32
    %10 = vector.broadcast %cst_3 : f32 to vector<16x1xf32>
    %11 = arith.divf %9, %10 : vector<16x1xf32>
    %12 = vector.broadcast %4 : vector<16x1xf32> to vector<16x32xf32>
    %13 = arith.subf %0, %12 : vector<16x32xf32>
    %cst_4 = arith.constant 9.99999974E-6 : f32
    %14 = vector.broadcast %cst_4 : f32 to vector<16x1xf32>
    %15 = arith.addf %11, %14 : vector<16x1xf32>
    %16 = math.rsqrt %15 : vector<16x1xf32>
    %17 = vector.broadcast %16 : vector<16x1xf32> to vector<16x32xf32>
    %18 = arith.mulf %13, %17 : vector<16x32xf32>
    %c0_5 = arith.constant 0 : index
    %c0_6 = arith.constant 0 : index
    %19 = vector.load %arg2[%c0_5, %c0_6] : memref<32x64xf32, #tpu.memory_space<vmem>>, vector<32x64xf32>
    %c0_7 = arith.constant 0 : index
    %c0_8 = arith.constant 0 : index
    %20 = vector.load %arg3[%c0_7, %c0_8] : memref<1x64xf32, #tpu.memory_space<vmem>>, vector<1x64xf32>
    %cst_9 = arith.constant dense<0.000000e+00> : vector<16x64xf32>
    %21 = tpu.matmul %18, %19, %cst_9 {dimension_numbers = #tpu.dot_dimension_numbers<[1], [0], [0], [1], [0, 0, 1, 1], [], []>} : vector<16x32xf32>, vector<32x64xf32>, vector<16x64xf32> -> vector<16x64xf32>
    %22 = vector.broadcast %20 : vector<1x64xf32> to vector<16x64xf32>
    %23 = arith.addf %21, %22 : vector<16x64xf32>
    %24 = math.tanh %23 : vector<16x64xf32>
    %c0_10 = arith.constant 0 : index
    %c0_11 = arith.constant 0 : index
    %25 = vector.load %arg4[%c0_10, %c0_11] : memref<64x32xf32, #tpu.memory_space<vmem>>, vector<64x32xf32>
    %c0_12 = arith.constant 0 : index
    %c0_13 = arith.constant 0 : index
    %26 = vector.load %arg5[%c0_12, %c0_13] : memref<1x32xf32, #tpu.memory_space<vmem>>, vector<1x32xf32>
    %cst_14 = arith.constant dense<0.000000e+00> : vector<16x32xf32>
    %27 = tpu.matmul %24, %25, %cst_14 {dimension_numbers = #tpu.dot_dimension_numbers<[1], [0], [0], [1], [0, 0, 1, 1], [], []>} : vector<16x64xf32>, vector<64x32xf32>, vector<16x32xf32> -> vector<16x32xf32>
    %28 = vector.broadcast %26 : vector<1x32xf32> to vector<16x32xf32>
    %29 = arith.addf %27, %28 : vector<16x32xf32>
    %30 = math.tanh %29 : vector<16x32xf32>
    %c0_15 = arith.constant 0 : index
    %c0_16 = arith.constant 0 : index
    %31 = vector.load %arg6[%c0_15, %c0_16] : memref<32x8xf32, #tpu.memory_space<vmem>>, vector<32x8xf32>
    %c0_17 = arith.constant 0 : index
    %c0_18 = arith.constant 0 : index
    %32 = vector.load %arg7[%c0_17, %c0_18] : memref<1x8xf32, #tpu.memory_space<vmem>>, vector<1x8xf32>
    %cst_19 = arith.constant dense<0.000000e+00> : vector<16x8xf32>
    %33 = tpu.matmul %30, %31, %cst_19 {dimension_numbers = #tpu.dot_dimension_numbers<[1], [0], [0], [1], [0, 0, 1, 1], [], []>} : vector<16x32xf32>, vector<32x8xf32>, vector<16x8xf32> -> vector<16x8xf32>
    %34 = vector.broadcast %32 : vector<1x8xf32> to vector<16x8xf32>
    %35 = arith.addf %33, %34 : vector<16x8xf32>
    %36 = math.tanh %35 : vector<16x8xf32>
    %c0_20 = arith.constant 0 : index
    %c0_21 = arith.constant 0 : index
    %37 = vector.load %arg8[%c0_20, %c0_21] : memref<16x8xf32, #tpu.memory_space<vmem>>, vector<16x8xf32>
    tpu.vector_store %arg8[%c0_20, %c0_21], %36 {strides = array<i32>} : memref<16x8xf32, #tpu.memory_space<vmem>>, vector<16x8xf32>,
    return
  }
  func.func @transform_0(%arg0: i32) -> (i32, i32) {
    %c0_i32 = arith.constant 0 : i32
    %c0_i32_0 = arith.constant 0 : i32
    return %arg0, %c0_i32 : i32, i32
  }
  func.func @transform_1(%arg0: i32) -> (i32, i32) {
    %c0_i32 = arith.constant 0 : i32
    %c0_i32_0 = arith.constant 0 : i32
    %c0_i32_1 = arith.constant 0 : i32
    return %c0_i32, %c0_i32_0 : i32, i32
  }
  func.func @transform_2(%arg0: i32) -> (i32, i32) {
    %c0_i32 = arith.constant 0 : i32
    %c0_i32_0 = arith.constant 0 : i32
    %c0_i32_1 = arith.constant 0 : i32
    return %c0_i32, %c0_i32_0 : i32, i32
  }
  func.func @transform_3(%arg0: i32) -> (i32, i32) {
    %c0_i32 = arith.constant 0 : i32
    %c0_i32_0 = arith.constant 0 : i32
    %c0_i32_1 = arith.constant 0 : i32
    return %c0_i32, %c0_i32_0 : i32, i32
  }
  func.func @transform_4(%arg0: i32) -> (i32, i32) {
    %c0_i32 = arith.constant 0 : i32
    %c0_i32_0 = arith.constant 0 : i32
    %c0_i32_1 = arith.constant 0 : i32
    return %c0_i32, %c0_i32_0 : i32, i32
  }
  func.func @transform_5(%arg0: i32) -> (i32, i32) {
    %c0_i32 = arith.constant 0 : i32
    %c0_i32_0 = arith.constant 0 : i32
    %c0_i32_1 = arith.constant 0 : i32
    return %c0_i32, %c0_i32_0 : i32, i32
  }
  func.func @transform_6(%arg0: i32) -> (i32, i32) {
    %c0_i32 = arith.constant 0 : i32
    %c0_i32_0 = arith.constant 0 : i32
    %c0_i32_1 = arith.constant 0 : i32
    return %c0_i32, %c0_i32_0 : i32, i32
  }
  func.func @transform_7(%arg0: i32) -> (i32, i32) {
    %c0_i32 = arith.constant 0 : i32
    %c0_i32_0 = arith.constant 0 : i32
    return %arg0, %c0_i32 : i32, i32
  }
}

</mosaic_0001>

<bundles_post_ra>
// kernel: tpu_custom_call.1
= control target key start
LH: loop header
LB: loop body
LE: loop exit
PB: predicated region body
PF: predicated region fallthrough
CT: control target
= control target key end

     0   :  { %vm28_vm0 = vcmask 261120   ;;  %vm165_vm1 = vcmask 523264   ;;  %vm343_vm2 = vcmask 64512   ;;  %s555_s0 = inlined_call_operand.vmem [shape: f32[16,32], index: 0, kind: input, shape index: {}]   ;;  %s556_s1 = inlined_call_operand.vmem [shape: f32[32,64], index: 1, kind: input, shape index: {}]   ;;  %s557_s3 = inlined_call_operand.vmem [shape: f32[64,32], index: 3, kind: input, shape index: {}]   ;;  %s558_s2 = inlined_call_operand.vmem [shape: f32[1,64], index: 2, kind: input, shape index: {}]   ;;  %s559_s5 = inlined_call_operand.vmem [shape: f32[32,8], index: 5, kind: input, shape index: {}]   ;;  %s560_s4 = inlined_call_operand.vmem [shape: f32[1,32], index: 4, kind: input, shape index: {}]   ;;  %s561_s6 = inlined_call_operand.vmem [shape: f32[1,8], index: 6, kind: input, shape index: {}]   ;;  %s562_s7 = inlined_call_operand.vmem [shape: f32[16,8], index: 7, kind: output, shape index: {}]  }
   0x1   :  { %v26_v0 = vld [vmem:[%s555_s0] sm:$0xff]  ;;  %v27_v1 = vld [vmem:[%s555_s0 + $0x8] sm:$0xff]  ;;  %v59_v14 = vld [vmem:[%s556_s1 + $0x18] sm:$0xff] }
   0x2   :  { %v29_v2 = vsel %vm28_vm0, %v26_v0, 0.0  ;;  %v32_v3 = vsel %vm28_vm0, %v27_v1, 0.0  ;;  %v58_v15 = vld [vmem:[%s556_s1 + $0x10] sm:$0xff]  ;;  %381 = vmatprep.subr.mxu0 %v59_v14  ;;  %v57_v16 = vld [vmem:[%s556_s1 + $0x8] sm:$0xff]  ;;  %v56_v17 = vld [vmem:[%s556_s1] sm:$0xff] }
   0x3   :  { %30 = vadd.xlane.f32.xlu0 %v29_v2  ;;  %382 = vmatpush3.msra.mxu0 %v59_v14  ;;  %v157_v28 = vld [vmem:[%s557_s3 + $0x38] sm:$0xff]  ;;  %v156_v29 = vld [vmem:[%s557_s3 + $0x30] sm:$0xff]  ;;  %v155_v30 = vld [vmem:[%s557_s3 + $0x28] sm:$0xff] }
   0x4   :  { %383 = vmatprep.subr.mxu0 %v58_v15  ;;  %392 = vmatprep.subr.mxu1 %v157_v28  ;;  %v154_v31 = vld [vmem:[%s557_s3 + $0x20] sm:$0xff]  ;;  %v153_v32 = vld [vmem:[%s557_s3 + $0x18] sm:$0xff]  ;;  %v152_v33 = vld [vmem:[%s557_s3 + $0x10] sm:$0xff] }
   0x5   :  { %384 = vmatpush3.msra.mxu0 %v58_v15  ;;  %393 = vmatpush3.msra.mxu1 %v157_v28  ;;  %v151_v34 = vld [vmem:[%s557_s3 + $0x8] sm:$0xff]  ;;  %v150_v35 = vld [vmem:[%s557_s3] sm:$0xff]  ;;  %v252_v43 = vld [vmem:[%s559_s5 + $0x18] sm:$0xff] }
   0x6   :  { %385 = vmatprep.subr.mxu0 %v57_v16  ;;  %394 = vmatprep.subr.mxu1 %v156_v29  ;;  %v350_v36 = vld [vmem:[%s558_s2] ss:$0 sm:$0xff]  ;;  %v251_v44 = vld [vmem:[%s559_s5 + $0x10] sm:$0xff]  ;;  %v250_v45 = vld [vmem:[%s559_s5 + $0x8] sm:$0xff] }
   0x7   :  { %33 = vadd.xlane.f32.xlu0 %v32_v3  ;;  %386 = vmatpush3.msra.mxu0 %v57_v16  ;;  %v249_v46 = vld [vmem:[%s559_s5] sm:$0xff] }
   0x8   :  { %387 = vmatprep.subr.mxu0 %v56_v17  ;;  %395 = vmatpush3.msra.mxu1 %v156_v29  ;;  %v353_v47 = vld [vmem:[%s560_s4] ss:$0 sm:$0xff] }
   0x9   :  { %388 = vmatpush3.msra.mxu0 %v56_v17  ;;  %396 = vmatprep.subr.mxu1 %v155_v30  ;;  %v356_v54 = vld [vmem:[%s561_s6] ss:$0 sm:$0xff] }
   0xa   :  { %397 = vmatpush3.msra.mxu1 %v155_v30  ;;  %411 = vmatprep.subr.mxu0 %v252_v43 }
   0xb   :  { %398 = vmatprep.subr.mxu1 %v154_v31 }
   0xc   :  { %399 = vmatpush3.msra.mxu1 %v154_v31 }
   0xd   :  { %400 = vmatprep.subr.mxu1 %v153_v32 }
   0xe   :  { %401 = vmatpush3.msra.mxu1 %v153_v32 }
   0xf   :  { %402 = vmatprep.subr.mxu1 %v152_v33 }
  0x10   :  { %403 = vmatpush3.msra.mxu1 %v152_v33 }
  0x11   :  { %404 = vmatprep.subr.mxu1 %v151_v34 }
  0x12   :  { %405 = vmatpush3.msra.mxu1 %v151_v34 }
  0x13   :  { %406 = vmatprep.subr.mxu1 %v150_v35 }
  0x14   :  { %407 = vmatpush3.msra.mxu1 %v150_v35 }
  0x8c   :  { %v31_v4 = vpop.xlane.xlu0 %30 }
  0x8d   :  { %v36_v5 = vmul.f32 0.03125, %v31_v4 }
  0x8f   :  { %v38_v6 = vsub.f32 %v26_v0, %v36_v5 }
  0x90   :  { %v34_v7 = vpop.xlane.xlu0 %33 }
  0x91   :  { %v37_v8 = vmul.f32 0.03125, %v34_v7  ;;  %v40_v9 = vmul.f32 %v38_v6, %v38_v6 }
  0x93   :  { %v39_v10 = vsub.f32 %v27_v1, %v37_v8  ;;  %v42_v11 = vsel %vm28_vm0, %v40_v9, 0.0 }
  0x94   :  { %43 = vadd.xlane.f32.xlu1 %v42_v11 }
  0x95   :  { %v41_v12 = vmul.f32 %v39_v10, %v39_v10 }
  0x97   :  { %v45_v13 = vsel %vm28_vm0, %v41_v12, 0.0 }
  0x98   :  { %46 = vadd.xlane.f32.xlu1 %v45_v13 }
 0x11d   :  { %v44_v18 = vpop.xlane.xlu1 %43 }
 0x11e   :  { %v48_v19 = vmul.f32 0.03125, %v44_v18 }
 0x120   :  { %v50_v20 = vadd.f32 1e-05, %v48_v19 }
 0x121   :  { %v47_v21 = vpop.xlane.xlu1 %46 }
 0x122   :  { %422 = vrsqrt.f32 %v50_v20  ;;  %v49_v22 = vmul.f32 0.03125, %v47_v21 }
 0x124   :  { %v51_v23 = vadd.f32 1e-05, %v49_v22 }
 0x126   :  { %424 = vrsqrt.f32 %v51_v23 }
 0x12f   :  { %v423_v24 = vpop.eup %422 }
 0x130   :  { %v54_v25 = vmul.f32 %v423_v24, %v38_v6 }
 0x132   :  { %389 = vmatprep.mubr.msk.f32.mxu0 %vm28_vm0, %v54_v25 }
 0x133   :  { %v425_v26 = vpop.eup %424 }
 0x134   :  { %v55_v27 = vmul.f32 %v425_v26, %v39_v10 }
 0x136   :  { %390 = vmatmul.mubr.msk.f32.vlgmr.msra.gmra.mxu0 %vm28_vm0, %v55_v27 }
 0x137   :  { %412 = vmatpush3.msra.mxu0 %v252_v43 }
 0x138   :  { %413 = vmatprep.subr.mxu0 %v251_v44 }
 0x139   :  { %414 = vmatpush3.msra.mxu0 %v251_v44 }
 0x13a   :  { %415 = vmatprep.subr.mxu0 %v250_v45 }
 0x13b   :  { %416 = vmatpush3.msra.mxu0 %v250_v45 }
 0x13c   :  { %417 = vmatprep.subr.mxu0 %v249_v46 }
 0x13d   :  { %418 = vmatpush3.msra.mxu0 %v249_v46 }
 0x1f6   :  { %v391_v37 = vpop.f32.mrf.mxu0 }
 0x1f7   :  { %v145_v38 = vadd.f32 %v391_v37, %v350_v36 }
 0x1f8   :  { %v139_v39 = vpop.f32.mrf.mxu0 }
 0x1f9   :  { %v140_v40 = vadd.f32 %v350_v36, %v139_v39 }
 0x1fb   :  { %426 = vtanh.f32 %v140_v40 }
 0x1fc   :  { %428 = vtanh.f32 %v145_v38 }
 0x208   :  { %v427_v41 = vpop.eup %426 }
 0x209   :  { %v429_v42 = vpop.eup %428  ;;  %408 = vmatprep.mubr.msk.f32.mxu1 %vm165_vm1, %v427_v41 }
 0x20a   :  { %409 = vmatmul.mubr.msk.f32.vlgmr.msra.gmra.mxu1 %vm165_vm1, %v429_v42 }
 0x2ca   :  { %v410_v48 = vpop.f32.mrf.mxu1 }
 0x2cb   :  { %v244_v49 = vadd.f32 %v410_v48, %v353_v47 }
 0x2cc   :  { %v238_v50 = vpop.f32.mrf.mxu1 }
 0x2cd   :  { %v239_v51 = vadd.f32 %v353_v47, %v238_v50 }
 0x2cf   :  { %430 = vtanh.f32 %v239_v51 }
 0x2d0   :  { %432 = vtanh.f32 %v244_v49 }
 0x2dc   :  { %v431_v52 = vpop.eup %430 }
 0x2dd   :  { %v433_v53 = vpop.eup %432  ;;  %419 = vmatprep.mubr.msk.f32.mxu0 %vm28_vm0, %v431_v52 }
 0x2de   :  { %420 = vmatmul.mubr.msk.f32.vlgmr.msra.gmra.mxu0 %vm28_vm0, %v433_v53 }
 0x39e   :  { %v421_v55 = vpop.f32.mrf.mxu0 }
 0x39f   :  { %v338_v56 = vadd.f32 %v421_v55, %v356_v54 }
 0x3a0   :  { %v332_v57 = vpop.f32.mrf.mxu0 }
 0x3a1   :  { %434 = vtanh.f32 %v338_v56  ;;  %v333_v58 = vadd.f32 %v356_v54, %v332_v57 }
 0x3a3   :  { %436 = vtanh.f32 %v333_v58 }
 0x3ae   :  { %v435_v59 = vpop.eup %434 }
 0x3af   :  { %345 = vst.msk [vmem:[%s562_s7 + $0x8] sm:$0xff] %vm343_vm2, %v435_v59 }
 0x3b0   :  { %v437_v60 = vpop.eup %436 }
 0x3b1   :  { %344 = vst.msk [vmem:[%s562_s7] sm:$0xff] %vm343_vm2, %v437_v60 }

</bundles_post_ra>
